<compile_context>
chip_gen: v7x
topology: tpu7x:2x2x1
jax: 0.10.0
libtpu: 0.0.40
codegen_flags: <defaults>
</compile_context>

<pallas_src>
import jax
import jax.numpy as jnp
from jax.experimental import pallas as pl
from jax.experimental.pallas import tpu as pltpu


def _adapt_kernel(scale_ref, shift_ref, value_ref, out_ref):
    """out = value * scale + shift, computed in f32, cast once on store.

    scale_ref / shift_ref : (td, 1)   float32
    value_ref / out_ref   : (td, tt)  value dtype
    """
    v = value_ref[...].astype(jnp.float32)
    out_ref[...] = (v * scale_ref[...] + shift_ref[...]).astype(out_ref.dtype)


def _sublane_quantum(itemsize):
    if itemsize >= 4:
        return 8
    if itemsize == 2:
        return 16
    return 32


def _tile_budget_bytes():
    """Per-streaming-tile VMEM budget (~1/16 of physical VMEM -> ~1/4 double-buffered)."""
    try:
        vmem_cap = int(pltpu.get_tpu_info().vmem_capacity_bytes)
    except Exception:  # no TPU / API unavailable at trace time
        vmem_cap = 64 << 20  # assume the smallest generation (v7x per-core VMEM)
    return max(1 << 20, min(vmem_cap // 16, 8 << 20))


def _pick_tiles(rows, gt, itemsize, budget):
    """Pick (td, tt) tiles: lane tile a fixed multiple of 128, sublane fills the budget."""
    q_sub = _sublane_quantum(itemsize)
    # Lane tile: fixed multiple of 128 (lane-dense stores); full dim only when small.
    tt_target = max(1024, min(4096, 128 * max(1, budget // (512 * itemsize * 128))))
    tt = gt if gt <= tt_target else tt_target
    # Sublane tile: fill the per-tile budget given tt.
    td_target = max(q_sub, (budget // max(tt * itemsize, 1)) // q_sub * q_sub)
    td = rows if rows <= td_target else td_target
    # Ensure >=2 grid blocks when possible so v7x's two TensorCores both get work.
    if pl.cdiv(rows, td) * pl.cdiv(gt, tt) < 2:
        if gt >= 256:
            tt = max(128, (tt // 2) // 128 * 128)
        elif rows >= 2 * q_sub:
            td = max(q_sub, (td // 2) // q_sub * q_sub)
    return td, tt


def adapt_forward(value, query, sg_embed, params, groups=1, *, donate_value=False):
    """value: (B, D, T), query: (Bv, Q), sg_embed: (Bv, 800) -> (B, D, T)."""
    B, D, T = value.shape
    Bv, _ = query.shape
    assert Bv in (1, B), f"query batch must be 1 (one-to-many) or {B} (pairwise), got {Bv}"
    assert D % groups == 0
    Dg = D // groups
    GT = groups * T
    R = B * Dg

    # --- hoisted GEMVs (tiny; f32, constants folded) -------------------------------
    q32 = query.astype(jnp.float32)
    sg32 = sg_embed.astype(jnp.float32)
    scale = q32 @ params["wg"] + params["bg"] + 1.0                                  # (Bv, Dg)
    shift = q32 @ params["wb"] + params["bb"] + sg32 @ params["ws"] + params["bs"]   # (Bv, Dg)
    # Per-row affine coefficients: broadcast over batch (one-to-many) or keep pairwise.
    scale2 = jnp.broadcast_to(scale, (B, Dg)).reshape(R, 1).astype(jnp.float32)
    shift2 = jnp.broadcast_to(shift, (B, Dg)).reshape(R, 1).astype(jnp.float32)

    # Contiguous view: (B, D, T) -> (B*Dg, G*T); each row shares one (scale, shift).
    value2 = value.reshape(R, GT)

    itemsize = jnp.dtype(value.dtype).itemsize
    budget = _tile_budget_bytes()
    td, tt = _pick_tiles(R, GT, itemsize, budget)
    grid = (pl.cdiv(R, td), pl.cdiv(GT, tt))   # GT axis innermost: scale/shift not re-DMA'd

    # VMEM: double-buffered value-in + out tiles, plus (lane-padded) scale/shift tiles.
    vmem_needed = 4 * td * tt * itemsize + 4 * td * 128 * 4
    vmem_limit = int(min(48 << 20, max(32 << 20, vmem_needed + (8 << 20))))

    cost = pl.CostEstimate(
        flops=2 * R * GT,
        transcendentals=0,
        bytes_accessed=2 * R * GT * itemsize + 2 * R * 4,
    )

    out2 = pl.pallas_call(
        _adapt_kernel,
        out_shape=jax.ShapeDtypeStruct((R, GT), value.dtype),
        grid=grid,
        in_specs=[
            pl.BlockSpec((td, 1), lambda i, j: (i, 0)),    # scale (f32)
            pl.BlockSpec((td, 1), lambda i, j: (i, 0)),    # shift (f32)
            pl.BlockSpec((td, tt), lambda i, j: (i, j)),   # value
        ],
        out_specs=pl.BlockSpec((td, tt), lambda i, j: (i, j)),
        compiler_params=pltpu.CompilerParams(
            dimension_semantics=("parallel", "parallel"),
            vmem_limit_bytes=vmem_limit),
        cost_estimate=cost,
        input_output_aliases=({2: 0} if donate_value else {}),
    )(scale2, shift2, value2)

    return out2.reshape(B, D, T)


def init_adapt_params(key, value_size, query_size=None, groups=1):
    """Deterministic PyTorch-Linear-style init (U(-1/sqrt(fan_in), +1/sqrt(fan_in)))."""
    if query_size is None:
        query_size = value_size
    d_out = value_size // groups
    ks = jax.random.split(key, 6)

    def linear(kw, kb, fan_in, fan_out):
        bound = 1.0 / jnp.sqrt(fan_in)
        w = jax.random.uniform(kw, (fan_in, fan_out), jnp.float32, -bound, bound)
        b = jax.random.uniform(kb, (1, fan_out), jnp.float32, -bound, bound)
        return w, b

    wg, bg = linear(ks[0], ks[1], query_size, d_out)   # fc_gamma
    wb, bb = linear(ks[2], ks[3], query_size, d_out)   # fc_beta
    ws, bs = linear(ks[4], ks[5], 800, d_out)          # fc_sg (800 hardcoded in the module)
    return dict(wg=wg, bg=bg, wb=wb, bb=bb, ws=ws, bs=bs)


def adapt_reference(value, query, sg_embed, params, groups=1):
    """Pure-JAX reference mirroring the PyTorch forward."""
    B, D, T = value.shape
    Bv, Dv = query.shape
    v = value.reshape(B, D // groups, groups, -1)
    gammas = (query @ params["wg"] + params["bg"]).reshape(Bv, D // groups, 1, 1)
    betas = (query @ params["wb"] + params["bb"]).reshape(Bv, D // groups, 1, 1)
    alpha = (sg_embed @ params["ws"] + params["bs"]).reshape(Bv, D // groups, 1, 1)
    out = v * (gammas + 1.0) + betas + alpha
    return out.reshape(B, D, -1)


if __name__ == "__main__":
    key = jax.random.PRNGKey(0)
    kv, kq, ksg, kp, kq2, kv3 = jax.random.split(key, 6)

    # Case 1: one-to-many adaptation (retrieval default), groups=1, f32.
    B, D, T, groups = 2, 32, 16, 1
    value = jax.random.normal(kv, (B, D, T), jnp.float32)
    query = jax.random.normal(kq, (1, D), jnp.float32)
    sg_embed = jax.random.normal(ksg, (1, 800), jnp.float32)
    params = init_adapt_params(kp, value_size=D, query_size=None, groups=groups)

    out = jax.block_until_ready(adapt_forward(value, query, sg_embed, params, groups=groups))
    ref = adapt_reference(value, query, sg_embed, params, groups=groups)
    assert out.shape == (B, D, T)
    assert jnp.allclose(out, ref, atol=1e-5, rtol=1e-5), "mismatch (one-to-many, groups=1)"

    # Case 2: pairwise adaptation (Bv == B), groups=2, f32.
    groups2 = 2
    params2 = init_adapt_params(kp, value_size=D, query_size=None, groups=groups2)
    query2 = jax.random.normal(kq2, (B, D), jnp.float32)
    sg2 = jax.random.normal(ksg, (B, 800), jnp.float32)

    out2 = jax.block_until_ready(adapt_forward(value, query2, sg2, params2, groups=groups2))
    ref2 = adapt_reference(value, query2, sg2, params2, groups=groups2)
    assert out2.shape == (B, D, T)
    assert jnp.allclose(out2, ref2, atol=1e-5, rtol=1e-5), "mismatch (pairwise, groups=2)"

    # Case 3: bf16 value with a non-128-aligned lane extent (exercises ragged blocks).
    B3, D3, T3, g3 = 2, 48, 200, 2
    value3 = jax.random.normal(kv3, (B3, D3, T3), jnp.float32).astype(jnp.bfloat16)
    query3 = jax.random.normal(kq, (1, D3), jnp.float32)
    sg3 = jax.random.normal(ksg, (1, 800), jnp.float32)
    params3 = init_adapt_params(kp, value_size=D3, query_size=None, groups=g3)

    out3 = jax.block_until_ready(adapt_forward(value3, query3, sg3, params3, groups=g3))
    ref3 = adapt_reference(value3, query3, sg3, params3, groups=g3)
    assert out3.shape == (B3, D3, T3)
    assert jnp.allclose(out3.astype(jnp.float32), ref3.astype(jnp.float32),
                        atol=3e-2, rtol=3e-2), "mismatch (bf16, ragged tiles)"

    print("KERNEL_OK")
</pallas_src>

<mosaic_0001>
module attributes {stable_mosaic.version = 11 : i64} {
  func.func @_adapt_kernel(%arg0: i32, %arg1: i32, %arg2: memref<32x1xf32, #tpu.memory_space<vmem>>, %arg3: memref<32x1xf32, #tpu.memory_space<vmem>>, %arg4: memref<32x16xf32, #tpu.memory_space<vmem>>, %arg5: memref<32x16xf32, #tpu.memory_space<vmem>>) attributes {dimension_semantics = [#tpu.dimension_semantics<parallel>, #tpu.dimension_semantics<parallel>], iteration_bounds = array<i64: 2, 1>, scalar_prefetch = 0 : i64, scratch_operands = 0 : i64, tpu.core_type = #tpu.core_type<tc>, window_params = [{transform_indices = @transform_0, window_bounds = array<i64: 32, 1>}, {transform_indices = @transform_1, window_bounds = array<i64: 32, 1>}, {transform_indices = @transform_2, window_bounds = array<i64: 32, 16>}, {transform_indices = @transform_3, window_bounds = array<i64: 32, 16>}]} {
    %c0 = arith.constant 0 : index
    %c0_0 = arith.constant 0 : index
    %0 = vector.load %arg4[%c0, %c0_0] : memref<32x16xf32, #tpu.memory_space<vmem>>, vector<32x16xf32>
    %c0_1 = arith.constant 0 : index
    %c0_2 = arith.constant 0 : index
    %1 = vector.load %arg2[%c0_1, %c0_2] : memref<32x1xf32, #tpu.memory_space<vmem>>, vector<32x1xf32>
    %2 = vector.broadcast %1 : vector<32x1xf32> to vector<32x16xf32>
    %3 = arith.mulf %0, %2 : vector<32x16xf32>
    %c0_3 = arith.constant 0 : index
    %c0_4 = arith.constant 0 : index
    %4 = vector.load %arg3[%c0_3, %c0_4] : memref<32x1xf32, #tpu.memory_space<vmem>>, vector<32x1xf32>
    %5 = vector.broadcast %4 : vector<32x1xf32> to vector<32x16xf32>
    %6 = arith.addf %3, %5 : vector<32x16xf32>
    %c0_5 = arith.constant 0 : index
    %c0_6 = arith.constant 0 : index
    %7 = vector.load %arg5[%c0_5, %c0_6] : memref<32x16xf32, #tpu.memory_space<vmem>>, vector<32x16xf32>
    tpu.vector_store %arg5[%c0_5, %c0_6], %6 {strides = array<i32>} : memref<32x16xf32, #tpu.memory_space<vmem>>, vector<32x16xf32>,
    return
  }
  func.func @transform_0(%arg0: i32, %arg1: i32) -> (i32, i32) {
    %c0_i32 = arith.constant 0 : i32
    %c0_i32_0 = arith.constant 0 : i32
    return %arg0, %c0_i32 : i32, i32
  }
  func.func @transform_1(%arg0: i32, %arg1: i32) -> (i32, i32) {
    %c0_i32 = arith.constant 0 : i32
    %c0_i32_0 = arith.constant 0 : i32
    return %arg0, %c0_i32 : i32, i32
  }
  func.func @transform_2(%arg0: i32, %arg1: i32) -> (i32, i32) {
    %c0_i32 = arith.constant 0 : i32
    return %arg0, %arg1 : i32, i32
  }
  func.func @transform_3(%arg0: i32, %arg1: i32) -> (i32, i32) {
    %c0_i32 = arith.constant 0 : i32
    return %arg0, %arg1 : i32, i32
  }
}

</mosaic_0001>

<bundles_post_ra>
// kernel: tpu_custom_call.1
= control target key start
LH: loop header
LB: loop body
LE: loop exit
PB: predicated region body
PF: predicated region fallthrough
CT: control target
= control target key end

     0   :  { %s503_s12 = smov 0   ;;  %s505_s13 = smov 0   ;;  %s546_s0 = inlined_call_operand.vmem [shape: f32[64,1], index: 0, kind: input, shape index: {}]   ;;  %s547_s1 = inlined_call_operand.vmem [shape: f32[64,1], index: 1, kind: input, shape index: {}]   ;;  %s548_s2 = inlined_call_operand.vmem [shape: f32[64,16], index: 2, kind: input, shape index: {}]   ;;  %s549_s3 = inlined_call_operand.vmem [shape: f32[64,16], index: 3, kind: output, shape index: {}]  }
   0x1   :  { %s507_s14 = smov 0  }
   0x2 LB: > { %s25_s15 = sadd.s32 1, %s476_s13  ;;  %p420_p0 = scmp.ge.s32.totalorder %s480_s14, 1  ;;  %s480_s14 = sphi %s507_s14, %s13_s14   ;;  %s476_s13 = sphi %s505_s13, %s551_s13   ;;  %s472_s12 = sphi %s503_s12, %s550_s12  }
   0x3   : > { %p27_p1 = scmp.ge.s32.totalorder %s25_s15, 2  ;;  %p179_p2 = scmp.lt.s32.totalorder %s480_s14, 3 }
   0x5   : > { %s553_s15 = smov (%p27_p1, %s25_s15), 0  ;;  %p180_p3 = pnand %p420_p0, %p179_p2 }
   0x6   : > { %s421_s16 = sshll.u32 (!%p180_p3), %s472_s12, 2  ;;  %v482_v0 = vmov (!%p180_p3), 0   ;;  %vm309_vm0 = vcmask (!%p180_p3), 130048  }
   0x7   : > { %183 = sbr.rel (%p180_p3) target bundleno = 161 (0xa1), region = 32  ;;  %457 = vset.pattern.permute.xlu1 (!%p180_p3), %v482_v0  ;;  %456 = vset.pattern.permute.xlu0 (!%p180_p3), %v482_v0  ;;  %p220_p4 = scmp.lt.s32.totalorder (!%p180_p3), %s421_s16, 7 }
   0xe   : > { %s555_s16 = smov (!%p220_p4, %s421_s16), 7 }
   0xf   : > { %s422_s17 = sshll.u32 %s555_s16, 3 }
  0x10   : > { %s223_s20 = scalar_lea.vmem %s546_s0, %s422_s17  ;;  %s229_s23 = scalar_lea.vmem %s547_s1, %s422_s17 }
  0x11   : > { %v255_v1 = vld [vmem:[%s223_s20 + $0x10] sm:$0xff]  ;;  %v253_v2 = vld [vmem:[%s223_s20] sm:$0xff]  ;;  %v254_v4 = vld [vmem:[%s223_s20 + $0x8] sm:$0xff]  ;;  %s238_s26 = scalar_lea.vmem %s548_s2, %s422_s17  ;;  %s247_s29 = scalar_lea.vmem %s549_s3, %s422_s17 }
  0x12   : > { %269 = vperm.xlu1 %457, %v255_v1   ;;  %259 = vperm.xlu0 %456, %v253_v2   ;;  %v281_v3 = vld [vmem:[%s229_s23] sm:$0xff]  ;;  %v282_v5 = vld [vmem:[%s229_s23 + $0x8] sm:$0xff]  ;;  %v256_v6 = vld [vmem:[%s223_s20 + $0x18] sm:$0xff] }
  0x13   : > { %v284_v7 = vld [vmem:[%s229_s23 + $0x18] sm:$0xff]  ;;  %v283_v8 = vld [vmem:[%s229_s23 + $0x10] sm:$0xff]  ;;  %v249_v10 = vld [vmem:[%s238_s26] sm:$0xff] }
  0x14   : > { %v250_v14 = vld [vmem:[%s238_s26 + $0x8] sm:$0xff]  ;;  %v251_v18 = vld [vmem:[%s238_s26 + $0x10] sm:$0xff]  ;;  %v252_v20 = vld [vmem:[%s238_s26 + $0x18] sm:$0xff] }
  0x16   : > { %287 = vperm.xlu1 %457, %v281_v3   ;;  %264 = vperm.xlu0 %456, %v254_v4  }
  0x1a   : > { %292 = vperm.xlu1 %457, %v282_v5   ;;  %274 = vperm.xlu0 %456, %v256_v6  }
  0x1e   : > { %302 = vperm.xlu1 %457, %v284_v7   ;;  %297 = vperm.xlu0 %456, %v283_v8  }
  0x91   : > { %v270_v9 = vpop.permute.xlu1 %269  ;;  %v260_v11 = vpop.permute.xlu0 %259 }
  0x92   : > { %v277_v12 = vmul.f32 %v260_v11, %v249_v10  ;;  %v279_v23 = vmul.f32 %v270_v9, %v251_v18 }
  0x95   : > { %v288_v13 = vpop.permute.xlu1 %287  ;;  %v265_v15 = vpop.permute.xlu0 %264 }
  0x96   : > { %v305_v16 = vadd.f32 %v288_v13, %v277_v12  ;;  %v278_v17 = vmul.f32 %v265_v15, %v250_v14 }
  0x98   : > { %310 = vst.msk [vmem:[%s247_s29] sm:$0xff] %vm309_vm0, %v305_v16 }
  0x99   : > { %v293_v19 = vpop.permute.xlu1 %292  ;;  %v275_v21 = vpop.permute.xlu0 %274 }
  0x9a   : > { %v306_v22 = vadd.f32 %v293_v19, %v278_v17  ;;  %v280_v24 = vmul.f32 %v275_v21, %v252_v20 }
  0x9c   : > { %311 = vst.msk [vmem:[%s247_s29 + $0x8] sm:$0xff] %vm309_vm0, %v306_v22 }
  0x9d   : > { %v303_v25 = vpop.permute.xlu1 %302  ;;  %v298_v26 = vpop.permute.xlu0 %297 }
  0x9e   : > { %v308_v27 = vadd.f32 %v303_v25, %v280_v24  ;;  %v307_v28 = vadd.f32 %v298_v26, %v279_v23 }
  0xa0   : > { %312 = vst.msk [vmem:[%s247_s29 + $0x10] sm:$0xff] %vm309_vm0, %v307_v28  ;;  %313 = vst.msk [vmem:[%s247_s29 + $0x18] sm:$0xff] %vm309_vm0, %v308_v27 }
  0xa1 PF: > { %s13_s14 = sadd.s32 1, %s480_s14   ;;  %s550_s12 = smov %s476_s13 }
  0xa2   : > { %p10_p5 = scmp.ge.s32.totalorder %s13_s14, 4   ;;  %s551_s13 = smov %s553_s15 }
  0xa4   :  { %12 = sbr.rel (!%p10_p5) target bundleno = 2 (0x2), region = 68 }

</bundles_post_ra>
